<compile_context>
chip_gen: v7x
topology: tpu7x:2x2x1
jax: 0.10.0
libtpu: 0.0.40
codegen_flags: <defaults>
</compile_context>

<pallas_src>
import math

import jax
import jax.numpy as jnp
from jax.experimental import pallas as pl
from jax.experimental.pallas import tpu as pltpu


def _rup(x, m):
    return ((x + m - 1) // m) * m


# --------------------------------------------------------------------------
# Stage 1: per-type feature projection  h = X @ W   (single batched MXU pass)
# --------------------------------------------------------------------------
def _proj_kernel(x_ref, w_ref, o_ref):
    o_ref[...] = jnp.dot(
        x_ref[...], w_ref[...], preferred_element_type=jnp.float32
    ).astype(o_ref.dtype)


def _project(x, w):
    """x: (B, N, Fin), w: (Fin, Fout) -> (B, N, Fout)."""
    B, N, Fin = x.shape
    Fout = w.shape[1]
    rows = B * N
    x2 = x.reshape(rows, Fin)

    # Robust tiling: pad rows up to a multiple of the tile (no silent
    # full-row fallback), slice the result back.
    tm = min(512, _rup(rows, 8))
    rows_pad = _rup(rows, tm)
    if rows_pad != rows:
        x2 = jnp.pad(x2, ((0, rows_pad - rows), (0, 0)))

    h2 = pl.pallas_call(
        _proj_kernel,
        out_shape=jax.ShapeDtypeStruct((rows_pad, Fout), x.dtype),
        grid_spec=pltpu.PrefetchScalarGridSpec(
            num_scalar_prefetch=0,
            grid=(rows_pad // tm,),
            in_specs=[
                pl.BlockSpec((tm, Fin), lambda i: (i, 0)),
                pl.BlockSpec((Fin, Fout), lambda i: (0, 0)),
            ],
            out_specs=pl.BlockSpec((tm, Fout), lambda i: (i, 0)),
        ),
        compiler_params=pltpu.CompilerParams(dimension_semantics=("parallel",)),
    )(x2, w)
    return h2[:rows].reshape(B, N, Fout)


# --------------------------------------------------------------------------
# Stage 2: Attention_InfLevel for ONE t1 against ALL t2, packed output slab
# --------------------------------------------------------------------------
def _make_attention_kernel(ntype, feat, lane_out_pad):
    pad = lane_out_pad - ntype * feat

    def kernel(*refs):
        # refs: h1, (h2_0, adj_0, ..., h2_{ntype-1}, adj_{ntype-1}),
        #       a1, a2, bias, o_ref
        h1_ref = refs[0]
        a1_ref = refs[1 + 2 * ntype]
        a2_ref = refs[2 + 2 * ntype]
        bias_ref = refs[3 + 2 * ntype]
        o_ref = refs[4 + 2 * ntype]

        h1 = h1_ref[...]                                   # (bb, N, F) f32
        a1 = a1_ref[...]                                   # (1, F) f32
        a2 = a2_ref[...]                                   # (1, F) f32
        bias = bias_ref[...]                               # (1, F) f32
        bb, n, f = h1.shape

        # e1[b,i] = h1[b,i,:] . a1  ->  (bb, N, 1) on the MXU (q = 1).
        # Keeps the saturated VPU slot free; the XLU lane-reduce disappears.
        a1b = jnp.broadcast_to(a1[None], (bb, 1, f))
        e1 = jnp.einsum('bnf,bqf->bnq', h1, a1b,
                        preferred_element_type=jnp.float32)

        a2b = jnp.broadcast_to(a2[None], (bb, 1, f))

        outs = []
        for t2 in range(ntype):
            h2 = refs[1 + 2 * t2][...]                     # (bb, M, F) f32
            adj = refs[2 + 2 * t2][...]                    # (bb, N, M) f32
            h2b = h2.astype(jnp.bfloat16)                  # MXU operand (f32 acc)

            # e2 is rank-1 along N: only (bb, 1, M) is computed; the add below
            # broadcasts over the sublane axis for free.  Kept f32 (feeds exp).
            e2 = jnp.einsum('bqf,bmf->bqm', a2b, h2,
                            preferred_element_type=jnp.float32)   # (bb, 1, M)

            e = e1 + e2                                    # (bb, N, M)
            e = jnp.where(e > 0, e, 0.2 * e)               # LeakyReLU(0.2)

            # Masked softmax over M (torch: -9e15 fill).  The reference's NaN
            # guard is dead code with max-subtracted softmax; rowdeg==0 below
            # already zeroes fully-masked rows.
            logits = jnp.where(adj > 0, e, -9.0e15)
            lmax = jnp.max(logits, axis=-1, keepdims=True)
            p = jnp.exp(logits - lmax)                     # sum over M >= 1

            # Fused softmax normalization + degree rescale as a per-row scale,
            # applied AFTER the matmul (commutes with the M-sum): divide goes
            # to the EUP, no (bb, N, M)-wide rescale pass remains.
            rowdeg = jnp.sum(adj, axis=-1, keepdims=True)  # (bb, N, 1)
            scale = rowdeg * pl.reciprocal(
                jnp.sum(p, axis=-1, keepdims=True), approx=True)

            ctx = jnp.einsum('bnm,bmf->bnf', p.astype(jnp.bfloat16), h2b,
                             preferred_element_type=jnp.float32)
            outs.append(ctx * scale + bias[None])          # (bb, N, F)

        if pad:
            outs.append(jnp.zeros((bb, n, pad), jnp.float32))
        # Single lane-dense (multiple-of-128) store for the whole t2 slab.
        o_ref[...] = jnp.concatenate(outs, axis=-1).astype(o_ref.dtype)

    return kernel


def _pick_batch_block(B, N, M_list, F, lane_out_pad, budget_bytes=10 << 20):
    """Largest divisor of B (capped at B//2 to keep >= 2 grid steps) whose
    per-step VMEM footprint fits budget_bytes.  Only pipelined BlockSpec
    operands carry the 2x double-buffer factor; in-kernel f32 temporaries are
    counted once; dims are rounded up to (8, 128) tiles before multiplying."""
    Np = _rup(N, 8)
    Fp = _rup(F, 128)
    io = Np * Fp                        # h1
    tmp = Np * Fp                       # e1 / scale-sized per-row temporaries
    for M in M_list:
        Mp_sub = _rup(M, 8)
        Mp_lane = _rup(M, 128)
        io += Mp_sub * Fp               # h2
        io += Np * Mp_lane              # adj
        tmp += 3 * Np * Mp_lane         # e, p, bf16 copy (approx)
        tmp += Np * Fp                  # ctx / out_t2
    io += Np * lane_out_pad             # packed output slab
    per_batch = 4 * (2 * io + tmp)      # f32 bytes; IO double-buffered
    bb = max(1, min(B, budget_bytes // max(per_batch, 1)))
    if B >= 2:
        bb = min(bb, B // 2)            # >= 2 parallel steps (v7x 2 TCs)
    bb = max(bb, 1)
    while B % bb:
        bb -= 1
    return bb


def _attention_all_t2(h1, h_list, adj_row, a1_row, a2_row, bias2d):
    """h1: (B,N,F); h_list[t2]: (B,M_t2,F); adj_row[t2]: (B,N,M_t2).
    Returns list of (B, N, F) outputs, one per t2."""
    B, N, F = h1.shape
    ntype = len(h_list)
    M_list = [h2.shape[1] for h2 in h_list]
    lane_out = ntype * F
    lane_out_pad = _rup(lane_out, 128)
    bb = _pick_batch_block(B, N, M_list, F, lane_out_pad)

    in_specs = [pl.BlockSpec((bb, N, F), lambda b: (b, 0, 0))]       # h1
    args = [h1]
    for t2 in range(ntype):
        M = M_list[t2]
        in_specs.append(pl.BlockSpec((bb, M, F), lambda b: (b, 0, 0)))   # h2
        in_specs.append(pl.BlockSpec((bb, N, M), lambda b: (b, 0, 0)))   # adj
        args += [h_list[t2], adj_row[t2]]
    in_specs += [pl.BlockSpec((1, F), lambda b: (0, 0))] * 3             # a1,a2,bias
    args += [a1_row, a2_row, bias2d]

    packed = pl.pallas_call(
        _make_attention_kernel(ntype, F, lane_out_pad),
        out_shape=jax.ShapeDtypeStruct((B, N, lane_out_pad), h1.dtype),
        grid_spec=pltpu.PrefetchScalarGridSpec(
            num_scalar_prefetch=0,
            grid=(B // bb,),
            in_specs=in_specs,
            out_specs=pl.BlockSpec((bb, N, lane_out_pad), lambda b: (b, 0, 0)),
        ),
        compiler_params=pltpu.CompilerParams(
            dimension_semantics=("parallel",),
            vmem_limit_bytes=32 << 20,
        ),
    )(*args)

    # Layout plumbing only: split the lane-dense slab back into per-t2 outputs.
    return [packed[:, :, t2 * F:(t2 + 1) * F] for t2 in range(ntype)]


# --------------------------------------------------------------------------
# Full module forward
# --------------------------------------------------------------------------
def graph_attention_convolution(inputs_list, adj_list, weights, a1_list, a2_list, bias):
    """Returns list (len ntype) of list (len ntype) of (B, N_t1, Fout) arrays."""
    ntype = len(inputs_list)
    Fout = weights[0].shape[1]
    bias2d = bias.reshape(1, Fout)

    # Projection once per type, reused across every (t1, t2) attention pair.
    h = [_project(inputs_list[i], weights[i]) for i in range(ntype)]

    outputs = []
    for t1 in range(ntype):
        a1_row = a1_list[t1].reshape(1, Fout)
        a2_row = a2_list[t1].reshape(1, Fout)
        outputs.append(
            _attention_all_t2(h[t1], h, adj_list[t1], a1_row, a2_row, bias2d))
    return outputs


# --------------------------------------------------------------------------
# Pure-JAX reference (transcription of the PyTorch forward, f32 throughout)
# --------------------------------------------------------------------------
def _ref_attention(h1, h2, adj, a1, a2):
    e1 = jnp.einsum('bnf,f->bn', h1, a1)[:, :, None]
    e2 = jnp.einsum('bmf,f->bm', h2, a2)[:, None, :]
    e = e1 + e2
    e = jnp.where(e > 0, e, 0.2 * e)
    logits = jnp.where(adj > 0, e, -9.0e15)
    lmax = jnp.max(logits, axis=-1, keepdims=True)
    p = jnp.exp(logits - lmax)
    att = p / jnp.sum(p, axis=-1, keepdims=True)
    att = jnp.where(jnp.isnan(att), 0.0, att)
    rowdeg = jnp.sum(adj, axis=-1, keepdims=True)
    att = att * rowdeg
    return jnp.einsum('bnm,bmf->bnf', att, h2)


def reference_forward(inputs_list, adj_list, weights, a1_list, a2_list, bias):
    ntype = len(inputs_list)
    h = [inputs_list[i] @ weights[i] for i in range(ntype)]
    outs = []
    for t1 in range(ntype):
        row = []
        for t2 in range(ntype):
            row.append(_ref_attention(h[t1], h[t2], adj_list[t1][t2],
                                      a1_list[t1], a2_list[t1]) + bias)
        outs.append(row)
    return outs


if __name__ == "__main__":
    ntype = 2
    B = 8                      # bsz * 4 with bsz = 2
    n_nodes = [8, 16]
    in_features = [16, 24]
    out_features = 32

    key = jax.random.PRNGKey(0)
    k_iter = iter(jax.random.split(key, 16))

    inputs_list = [
        jax.random.normal(next(k_iter), (B, n_nodes[i], in_features[i]), jnp.float32)
        for i in range(ntype)
    ]

    weights = []
    for i in range(ntype):
        std = 1.414 * math.sqrt(2.0 / (in_features[i] + out_features))
        weights.append(std * jax.random.normal(
            next(k_iter), (in_features[i], out_features), jnp.float32))

    a_std = 1.414 * math.sqrt(2.0 / (out_features + 1))
    a1_list = [a_std * jax.random.normal(next(k_iter), (out_features,), jnp.float32)
               for _ in range(ntype)]
    a2_list = [a_std * jax.random.normal(next(k_iter), (out_features,), jnp.float32)
               for _ in range(ntype)]

    stdv = 1.0 / math.sqrt(out_features)
    bias = jax.random.uniform(next(k_iter), (out_features,),
                              minval=-stdv, maxval=stdv, dtype=jnp.float32)

    adj_list = []
    for t1 in range(ntype):
        row = []
        for t2 in range(ntype):
            u = jax.random.uniform(next(k_iter), (B, n_nodes[t1], n_nodes[t2]),
                                   dtype=jnp.float32)
            row.append(jnp.where(u > 0.4, u, 0.0))   # sparse positive adjacency
        adj_list.append(row)

    outs = graph_attention_convolution(inputs_list, adj_list, weights,
                                       a1_list, a2_list, bias)
    outs = jax.block_until_ready(outs)

    refs = reference_forward(inputs_list, adj_list, weights, a1_list, a2_list, bias)
    # Tolerance relaxed vs. the f32 reference: the att@h2 matmul uses bf16
    # operands (f32 accumulation) and softmax normalization uses the EUP
    # approximate reciprocal.
    for t1 in range(ntype):
        for t2 in range(ntype):
            assert outs[t1][t2].shape == (B, n_nodes[t1], out_features)
            assert jnp.allclose(outs[t1][t2], refs[t1][t2], rtol=3e-2, atol=3e-2), \
                f"mismatch vs reference at ({t1},{t2})"

    print("KERNEL_OK")
</pallas_src>

<mosaic_0001>
module attributes {stable_mosaic.version = 11 : i64} {
  func.func @_proj_kernel(%arg0: i32, %arg1: memref<64x16xf32, #tpu.memory_space<vmem>>, %arg2: memref<16x32xf32, #tpu.memory_space<vmem>>, %arg3: memref<64x32xf32, #tpu.memory_space<vmem>>) attributes {dimension_semantics = [#tpu.dimension_semantics<parallel>], iteration_bounds = array<i64: 1>, scalar_prefetch = 0 : i64, scratch_operands = 0 : i64, tpu.core_type = #tpu.core_type<tc>, window_params = [{transform_indices = @transform_0, window_bounds = array<i64: 64, 16>}, {pipeline_mode = #tpu.pipeline_mode<synchronous>, transform_indices = @transform_1, window_bounds = array<i64: 16, 32>}, {transform_indices = @transform_2, window_bounds = array<i64: 64, 32>}]} {
    %c0 = arith.constant 0 : index
    %c0_0 = arith.constant 0 : index
    %0 = vector.load %arg1[%c0, %c0_0] : memref<64x16xf32, #tpu.memory_space<vmem>>, vector<64x16xf32>
    %c0_1 = arith.constant 0 : index
    %c0_2 = arith.constant 0 : index
    %1 = vector.load %arg2[%c0_1, %c0_2] : memref<16x32xf32, #tpu.memory_space<vmem>>, vector<16x32xf32>
    %cst = arith.constant dense<0.000000e+00> : vector<64x32xf32>
    %2 = tpu.matmul %0, %1, %cst {dimension_numbers = #tpu.dot_dimension_numbers<[1], [0], [0], [1], [0, 0, 1, 1], [], []>} : vector<64x16xf32>, vector<16x32xf32>, vector<64x32xf32> -> vector<64x32xf32>
    %c0_3 = arith.constant 0 : index
    %c0_4 = arith.constant 0 : index
    %3 = vector.load %arg3[%c0_3, %c0_4] : memref<64x32xf32, #tpu.memory_space<vmem>>, vector<64x32xf32>
    tpu.vector_store %arg3[%c0_3, %c0_4], %2 {strides = array<i32>} : memref<64x32xf32, #tpu.memory_space<vmem>>, vector<64x32xf32>,
    return
  }
  func.func @transform_0(%arg0: i32) -> (i32, i32) {
    %c0_i32 = arith.constant 0 : i32
    %c0_i32_0 = arith.constant 0 : i32
    return %arg0, %c0_i32 : i32, i32
  }
  func.func @transform_1(%arg0: i32) -> (i32, i32) {
    %c0_i32 = arith.constant 0 : i32
    %c0_i32_0 = arith.constant 0 : i32
    %c0_i32_1 = arith.constant 0 : i32
    return %c0_i32, %c0_i32_0 : i32, i32
  }
  func.func @transform_2(%arg0: i32) -> (i32, i32) {
    %c0_i32 = arith.constant 0 : i32
    %c0_i32_0 = arith.constant 0 : i32
    return %arg0, %c0_i32 : i32, i32
  }
}

</mosaic_0001>

<bundles_post_ra>
// kernel: tpu_custom_call.1
= control target key start
LH: loop header
LB: loop body
LE: loop exit
PB: predicated region body
PF: predicated region fallthrough
CT: control target
= control target key end

     0   :  { %vm21_vm0 = vcmask 130048   ;;  %vm151_vm1 = vcmask 261120   ;;  %s289_s1 = inlined_call_operand.vmem [shape: f32[16,32], index: 1, kind: input, shape index: {}]   ;;  %s290_s0 = inlined_call_operand.vmem [shape: f32[64,16], index: 0, kind: input, shape index: {}]   ;;  %s291_s2 = inlined_call_operand.vmem [shape: f32[64,32], index: 2, kind: output, shape index: {}]  }
   0x1   :  { %v19_v0 = vld [vmem:[%s289_s1] sm:$0xff]  ;;  %v20_v1 = vld [vmem:[%s289_s1 + $0x8] sm:$0xff]  ;;  %v13_v7 = vld [vmem:[%s290_s0 + $0x10] sm:$0xff] }
   0x2   :  { %v11_v2 = vld [vmem:[%s290_s0] sm:$0xff]  ;;  %v198_v3 = vpack.c.bf16 %v20_v1, %v19_v0  ;;  %v12_v5 = vld [vmem:[%s290_s0 + $0x8] sm:$0xff]  ;;  %v17_v8 = vld [vmem:[%s290_s0 + $0x30] sm:$0xff] }
   0x3   :  { %186 = vmatprep.mubr.msk.f32.mxu0 %vm21_vm0, %v11_v2  ;;  %v15_v4 = vld [vmem:[%s290_s0 + $0x20] sm:$0xff]  ;;  %v16_v6 = vld [vmem:[%s290_s0 + $0x28] sm:$0xff]  ;;  %v14_v9 = vld [vmem:[%s290_s0 + $0x18] sm:$0xff] }
   0x4   :  { %192 = vmatprep.mubr.msk.f32.mxu1 %vm21_vm0, %v15_v4  ;;  %199 = vmatprep.subr.bf16.mxu0 %v198_v3  ;;  %v18_v10 = vld [vmem:[%s290_s0 + $0x38] sm:$0xff] }
   0x5   :  { %202 = vmatprep.subr.bf16.mxu1 %v198_v3  ;;  %201 = vmatpush3.bf16.msra.mxu0 %v198_v3 }
   0x6   :  { %203 = vmatpush3.bf16.msra.mxu1 %v198_v3 }
   0x8   :  { %187 = vmatmul.mubr.msk.f32.vlgmr.msra.gmra.mrb[0].mxu0 %vm21_vm0, %v12_v5 }
   0x9   :  { %193 = vmatmul.mubr.msk.f32.vlgmr.msra.gmra.mrb[0].mxu1 %vm21_vm0, %v16_v6  ;;  %189 = vmatprep.mubr.msk.f32.mxu0 %vm21_vm0, %v13_v7 }
   0xa   :  { %195 = vmatprep.mubr.msk.f32.mxu1 %vm21_vm0, %v17_v8 }
   0xc   :  { %190 = vmatmul.mubr.msk.f32.gmra.mrb[2].mxu0 %vm21_vm0, %v14_v9 }
   0xd   :  { %196 = vmatmul.mubr.msk.f32.gmra.mrb[2].mxu1 %vm21_vm0, %v18_v10 }
  0xdb   :  { %v188_v11 = vpop.f32.mrb[0].mxu0 }
  0xdc   :  { %v194_v12 = vpop.f32.mrb[0].mxu1  ;;  %153 = vst.msk [vmem:[%s291_s2 + $0x8] sm:$0xff] %vm151_vm1, %v188_v11  ;;  %v112_v13 = vpop.f32.mrb[1].mxu0 }
  0xdd   :  { %157 = vst.msk [vmem:[%s291_s2 + $0x28] sm:$0xff] %vm151_vm1, %v194_v12  ;;  %v132_v14 = vpop.f32.mrb[1].mxu1  ;;  %152 = vst.msk [vmem:[%s291_s2] sm:$0xff] %vm151_vm1, %v112_v13 }
  0xde   :  { %156 = vst.msk [vmem:[%s291_s2 + $0x20] sm:$0xff] %vm151_vm1, %v132_v14 }
  0xdf   :  { %v191_v15 = vpop.f32.mrb[2].mxu0 }
  0xe0   :  { %v197_v16 = vpop.f32.mrb[2].mxu1  ;;  %155 = vst.msk [vmem:[%s291_s2 + $0x18] sm:$0xff] %vm151_vm1, %v191_v15  ;;  %v122_v17 = vpop.f32.mrb[3].mxu0 }
  0xe1   :  { %159 = vst.msk [vmem:[%s291_s2 + $0x38] sm:$0xff] %vm151_vm1, %v197_v16  ;;  %v142_v18 = vpop.f32.mrb[3].mxu1  ;;  %154 = vst.msk [vmem:[%s291_s2 + $0x10] sm:$0xff] %vm151_vm1, %v122_v17 }
  0xe2   :  { %158 = vst.msk [vmem:[%s291_s2 + $0x30] sm:$0xff] %vm151_vm1, %v142_v18 }

</bundles_post_ra>
